<compile_context>
chip_gen: v6e
topology: v6e:2x2x1
jax: 0.10.0
libtpu: 0.0.40
codegen_flags: <defaults>
</compile_context>

<pallas_src>
import functools

import jax
import jax.numpy as jnp
import numpy as np
from jax import lax
from jax.experimental import pallas as pl
from jax.experimental.pallas import tpu as pltpu

LANE = 128


def _round_up(x, m):
    return (x + m - 1) // m * m


def _compiler_params(*semantics):
    # 40 MiB scoped VMEM: safe on v7x (64 MiB physical) with headroom for
    # compiler-internal scratch, comfortably below v5e/v6e (128 MiB).
    return pltpu.CompilerParams(
        dimension_semantics=semantics,
        vmem_limit_bytes=40 * 1024 * 1024,
    )


# ---------------------------------------------------------------------------
# Kernels
# ---------------------------------------------------------------------------
def _project_kernel(x_ref, w_ref, a_ref, h_ref, s_ref):
    """h = x_tile @ W (bf16 out), scores = h @ [a_self | a_neigh] (f32 out).

    W and the (padded) attention-vector pair stay resident across the grid.
    Scores are computed here once per layer so the attention kernel never has
    to re-run the skinny per-tile matmuls.
    """
    h = jnp.dot(x_ref[...], w_ref[...], preferred_element_type=jnp.float32)
    s_ref[...] = jnp.dot(h, a_ref[...], preferred_element_type=jnp.float32)
    h_ref[...] = h.astype(jnp.bfloat16)


def _gat_flash_kernel(self_ref, neigh_ref, m_ref, bias_ref, h_ref, o_ref,
                      m_sc, l_sc, acc_sc, *, alpha):
    """Flash-style GAT attention for a (row tile, column chunk) grid step.

    self_ref  : (TM, 1)   f32  h_i . a_self       (row tile, const over k)
    neigh_ref : (1, TK)   f32  h_j . a_neigh      (column chunk)
    m_ref     : (TM, TK)  bf16 M masked by adjacency (0 on non-edges)
    bias_ref  : (TM, TK)  bf16 0 on edges, -9e15 on non-edges
    h_ref     : (TK, W)   bf16 projected features for this column chunk
    o_ref     : (TM, W)   f32  ELU(softmax(logits) @ h), written at last k
    scratch   : m_sc/l_sc (TM,1), acc_sc (TM,W) f32 online-softmax state
    """
    kc = pl.program_id(1)

    @pl.when(kc == 0)
    def _():
        m_sc[...] = jnp.full_like(m_sc, -jnp.inf)
        l_sc[...] = jnp.zeros_like(l_sc)
        acc_sc[...] = jnp.zeros_like(acc_sc)

    # Attention logits: leaky((self_i + neigh_j) * M_masked) + bias.
    s = (self_ref[...] + neigh_ref[...]) * m_ref[...].astype(jnp.float32)
    s = jnp.maximum(s, alpha * s)                        # LeakyReLU
    s = s + bias_ref[...].astype(jnp.float32)            # -9e15 on non-edges

    # Online softmax update (fully masked chunks are wiped by the correction
    # factor once a real entry appears; self-loops guarantee one exists).
    m_prev = m_sc[...]
    m_new = jnp.maximum(m_prev, jnp.max(s, axis=1, keepdims=True))
    corr = jnp.exp(m_prev - m_new)
    p = jnp.exp(s - m_new)
    l_sc[...] = corr * l_sc[...] + jnp.sum(p, axis=1, keepdims=True)
    acc_sc[...] = corr * acc_sc[...] + jnp.dot(
        p.astype(jnp.bfloat16), h_ref[...], preferred_element_type=jnp.float32)
    m_sc[...] = m_new

    @pl.when(kc == pl.num_programs(1) - 1)
    def _():
        hp = acc_sc[...] * pl.reciprocal(l_sc[...], approx=True)
        # ELU (clamp exp argument so the discarded branch can never overflow).
        o_ref[...] = jnp.where(hp > 0, hp, jnp.exp(jnp.minimum(hp, 0.0)) - 1.0)


def _cluster_kernel(h_ref, mu_ref, musq_ref, z_ref, zb_ref, q_ref,
                    *, v, num_clusters):
    """z = L2-normalize(h) (f32 + bf16 copy), q = Student-t soft assignment."""
    h = h_ref[...]                                               # (TM, EPAD)
    sq = jnp.sum(h * h, axis=1, keepdims=True)
    z = h * lax.rsqrt(jnp.maximum(sq, jnp.float32(1e-24)))
    z_ref[...] = z
    zb_ref[...] = z.astype(jnp.bfloat16)                         # decoder feed

    # ||z_i - mu_j||^2 = ||z_i||^2 + ||mu_j||^2 - 2 z_i . mu_j
    z_sq = jnp.sum(z * z, axis=1, keepdims=True)                 # (TM, 1)
    cross = lax.dot_general(z, mu_ref[...], (((1,), (1,)), ((), ())),
                            preferred_element_type=jnp.float32)   # (TM, KPAD)
    dist = jnp.maximum(z_sq + musq_ref[...] - 2.0 * cross, 0.0)

    q = pl.reciprocal(1.0 + dist * jnp.float32(1.0 / v), approx=True)
    exponent = (v + 1.0) / 2.0
    if abs(exponent - 1.0) > 1e-12:
        q = q ** exponent
    # Zero the padded (fake) cluster columns before row-normalizing.
    col = lax.broadcasted_iota(jnp.int32, q.shape, 1)
    q = jnp.where(col < num_clusters, q, 0.0)
    q = q * pl.reciprocal(jnp.sum(q, axis=1, keepdims=True), approx=True)
    q_ref[...] = q


def _decoder_kernel(zr_ref, zc_ref, o_ref):
    """A_pred tile = sigmoid(z_rows @ z_cols^T), bf16 inputs/output."""
    logits = lax.dot_general(zr_ref[...], zc_ref[...],
                             (((1,), (1,)), ((), ())),
                             preferred_element_type=jnp.float32)
    o_ref[...] = pl.reciprocal(1.0 + jnp.exp(-logits),
                               approx=True).astype(o_ref.dtype)


# ---------------------------------------------------------------------------
# Wrapper
# ---------------------------------------------------------------------------
def daegc_forward(x, adj, M, params, alpha=0.2, v=1.0, tm=None, tk=None, tn=None):
    N, F = x.shape
    HID = params["W1"].shape[1]
    EMB = params["W2"].shape[1]
    K = params["mu"].shape[0]
    FPAD = _round_up(F, LANE)
    HPAD = _round_up(HID, LANE)
    EPAD = _round_up(EMB, LANE)
    KPAD = _round_up(K, LANE)
    SPAD = LANE            # lane-dense width for the (self, neigh) score output

    # Defaults sized for the 256x256 MXUs on v6e/v7x (fine on v5e too).
    if tm is None:
        tm = min(N, 256)
    if tk is None:
        tk = min(N, 512)
    if tn is None:
        tn = min(N, 512)
    assert N % tm == 0 and (tm % 8 == 0 or tm == N), "row tile must divide N (8-aligned)"
    assert N % tk == 0 and (tk % LANE == 0 or tk == N), "attn col tile must divide N (128-aligned)"
    assert N % tn == 0 and (tn % LANE == 0 or tn == N), "decoder col tile must divide N (128-aligned)"

    f32, bf16 = jnp.float32, jnp.bfloat16

    def pad2(a, rows, cols):
        a = jnp.asarray(a, f32)
        return jnp.zeros((rows, cols), f32).at[:a.shape[0], :a.shape[1]].set(a)

    # Zero-padded, lane-dense parameters (pads are mathematically inert).
    x_pad = pad2(x, N, FPAD)
    w1 = pad2(params["W1"], FPAD, HPAD)
    w2 = pad2(params["W2"], HPAD, EPAD)
    a1 = pad2(jnp.concatenate([params["a_self1"], params["a_neigh1"]], axis=1),
              HPAD, SPAD)
    a2 = pad2(jnp.concatenate([params["a_self2"], params["a_neigh2"]], axis=1),
              EPAD, SPAD)
    mu = pad2(params["mu"], KPAD, EPAD)
    mu_sq = pad2(jnp.sum(jnp.asarray(params["mu"], f32) ** 2, axis=1,
                         keepdims=True).T, 1, KPAD)               # (1, KPAD)

    # Fold the adjacency mask into the proximity stream once (reused by both
    # GAT layers); stream both as bf16 to halve the dominant O(N^2) HBM reads.
    edge = jnp.asarray(adj, f32) > 0
    m_masked = jnp.where(edge, jnp.asarray(M, f32), 0.0).astype(bf16)
    att_bias = jnp.where(edge, jnp.float32(0.0), jnp.float32(-9e15)).astype(bf16)

    row_sem = _compiler_params("parallel")

    def project(inp, w, a_pair, width):
        h_bf, scores = pl.pallas_call(
            _project_kernel,
            out_shape=(jax.ShapeDtypeStruct((N, width), bf16),
                       jax.ShapeDtypeStruct((N, SPAD), f32)),
            grid=(N // tm,),
            in_specs=[pl.BlockSpec((tm, inp.shape[1]), lambda i: (i, 0)),
                      pl.BlockSpec(w.shape, lambda i: (0, 0)),        # resident
                      pl.BlockSpec(a_pair.shape, lambda i: (0, 0))],  # resident
            out_specs=(pl.BlockSpec((tm, width), lambda i: (i, 0)),
                       pl.BlockSpec((tm, SPAD), lambda i: (i, 0))),
            compiler_params=row_sem,
        )(inp, w, a_pair)
        # Tiny layout plumbing: (N,1) self scores and (1,N) neighbour scores.
        return h_bf, scores[:, 0:1], scores[:, 1:2].T

    def gat_layer(h_bf, self_col, neigh_row, width):
        return pl.pallas_call(
            functools.partial(_gat_flash_kernel, alpha=float(alpha)),
            out_shape=jax.ShapeDtypeStruct((N, width), f32),
            grid=(N // tm, N // tk),
            in_specs=[pl.BlockSpec((tm, 1), lambda i, k: (i, 0)),     # self
                      pl.BlockSpec((1, tk), lambda i, k: (0, k)),     # neigh
                      pl.BlockSpec((tm, tk), lambda i, k: (i, k)),    # M_masked
                      pl.BlockSpec((tm, tk), lambda i, k: (i, k)),    # bias
                      pl.BlockSpec((tk, width), lambda i, k: (k, 0))],# h chunk
            out_specs=pl.BlockSpec((tm, width), lambda i, k: (i, 0)),
            scratch_shapes=[pltpu.VMEM((tm, 1), f32),     # running max
                            pltpu.VMEM((tm, 1), f32),     # running sum
                            pltpu.VMEM((tm, width), f32)],  # accumulator
            compiler_params=_compiler_params("parallel", "arbitrary"),
        )(self_col, neigh_row, m_masked, att_bias, h_bf)

    # --- GAT encoder --------------------------------------------------------
    p1_bf, self1, neigh1 = project(x_pad, w1, a1, HPAD)   # x @ W1 (+ scores)
    h1 = gat_layer(p1_bf, self1, neigh1, HPAD)            # layer 1 (ELU), f32
    p2_bf, self2, neigh2 = project(h1, w2, a2, EPAD)      # h1 @ W2 (+ scores)
    h2 = gat_layer(p2_bf, self2, neigh2, EPAD)            # layer 2 (ELU), f32

    # --- z / q (row tiled, lane-dense padded outputs) ------------------------
    z_pad, zb_pad, q_pad = pl.pallas_call(
        functools.partial(_cluster_kernel, v=float(v), num_clusters=K),
        out_shape=(jax.ShapeDtypeStruct((N, EPAD), f32),
                   jax.ShapeDtypeStruct((N, EPAD), bf16),
                   jax.ShapeDtypeStruct((N, KPAD), f32)),
        grid=(N // tm,),
        in_specs=[pl.BlockSpec((tm, EPAD), lambda i: (i, 0)),
                  pl.BlockSpec((KPAD, EPAD), lambda i: (0, 0)),   # resident
                  pl.BlockSpec((1, KPAD), lambda i: (0, 0))],     # resident
        out_specs=(pl.BlockSpec((tm, EPAD), lambda i: (i, 0)),
                   pl.BlockSpec((tm, EPAD), lambda i: (i, 0)),
                   pl.BlockSpec((tm, KPAD), lambda i: (i, 0))),
        compiler_params=row_sem,
    )(h2, mu, mu_sq)

    # --- A_pred = sigmoid(z @ z^T), (tm, tn)-tiled, bf16 in / bf16 out --------
    a_pred = pl.pallas_call(
        _decoder_kernel,
        out_shape=jax.ShapeDtypeStruct((N, N), bf16),
        grid=(N // tm, N // tn),
        in_specs=[pl.BlockSpec((tm, EPAD), lambda i, j: (i, 0)),
                  pl.BlockSpec((tn, EPAD), lambda i, j: (j, 0))],
        out_specs=pl.BlockSpec((tm, tn), lambda i, j: (i, j)),
        compiler_params=_compiler_params("parallel", "parallel"),
    )(zb_pad, zb_pad)

    return a_pred, z_pad[:, :EMB], q_pad[:, :K]


# ---------------------------------------------------------------------------
# Pure-JAX reference (ground truth for the asserts)
# ---------------------------------------------------------------------------
def daegc_reference(x, adj, M, params, alpha=0.2, v=1.0):
    def gat_layer(inp, W, a_self, a_neigh):
        h = inp @ W
        attn = (h @ a_self) + (h @ a_neigh).T
        attn = attn * M
        attn = jnp.where(attn > 0, attn, alpha * attn)
        masked = jnp.where(adj > 0, attn, -9e15)
        att = jax.nn.softmax(masked, axis=1)
        hp = att @ h
        return jnp.where(hp > 0, hp, jnp.exp(hp) - 1.0)

    h1 = gat_layer(x, params["W1"], params["a_self1"], params["a_neigh1"])
    h2 = gat_layer(h1, params["W2"], params["a_self2"], params["a_neigh2"])
    z = h2 / jnp.maximum(jnp.linalg.norm(h2, axis=1, keepdims=True), 1e-12)
    A_pred = jax.nn.sigmoid(z @ z.T)
    mu = params["mu"]
    dist = jnp.sum((z[:, None, :] - mu[None, :, :]) ** 2, axis=2)
    q = 1.0 / (1.0 + dist / v)
    q = q ** ((v + 1.0) / 2.0)
    q = q / jnp.sum(q, axis=1, keepdims=True)
    return A_pred, z, q


def init_params(key, num_features, hidden_size, embedding_size, num_clusters):
    ks = jax.random.split(key, 7)

    def xavier_uniform(k, shape, gain=1.414):
        a = gain * np.sqrt(6.0 / (shape[0] + shape[1]))
        return jax.random.uniform(k, shape, jnp.float32, -a, a)

    std = np.sqrt(2.0 / (num_clusters + embedding_size))
    return {
        "W1": xavier_uniform(ks[0], (num_features, hidden_size)),
        "a_self1": xavier_uniform(ks[1], (hidden_size, 1)),
        "a_neigh1": xavier_uniform(ks[2], (hidden_size, 1)),
        "W2": xavier_uniform(ks[3], (hidden_size, embedding_size)),
        "a_self2": xavier_uniform(ks[4], (embedding_size, 1)),
        "a_neigh2": xavier_uniform(ks[5], (embedding_size, 1)),
        "mu": std * jax.random.normal(ks[6], (num_clusters, embedding_size),
                                      jnp.float32),
    }


if __name__ == "__main__":
    # Small shapes; N=256 with 128-wide tiles exercises multi-step row and
    # column (online-softmax) grids.
    N, F_DIM, HIDDEN, EMBED, K = 256, 48, 20, 12, 5
    ALPHA, V = 0.2, 1.0

    key = jax.random.PRNGKey(0)
    kx, kadj, kparam = jax.random.split(key, 3)

    x = jax.random.normal(kx, (N, F_DIM), jnp.float32)
    # symmetric binary adjacency with self-loops (guarantees non-empty rows)
    raw = jax.random.uniform(kadj, (N, N)) < 0.15
    adj = jnp.maximum(raw, raw.T).astype(jnp.float32)
    adj = jnp.maximum(adj, jnp.eye(N, dtype=jnp.float32))
    # simple proximity matrix M (row-normalized (A + A^2)/2)
    m_raw = (adj + adj @ adj) / 2.0
    M = m_raw / jnp.sum(m_raw, axis=1, keepdims=True)

    params = init_params(kparam, F_DIM, HIDDEN, EMBED, K)

    A_pred, z, q = daegc_forward(x, adj, M, params, alpha=ALPHA, v=V,
                                 tm=128, tk=128, tn=128)
    jax.block_until_ready((A_pred, z, q))

    # Sanity checks against the pure-JAX f32 reference (kernel uses bf16 MXU
    # operands/streams and EUP approx reciprocals, hence 2e-2 tolerances).
    A_ref, z_ref, q_ref = daegc_reference(x, adj, M, params, alpha=ALPHA, v=V)
    A_np = np.asarray(A_pred).astype(np.float32)
    z_np = np.asarray(z)
    q_np = np.asarray(q)
    assert A_pred.shape == (N, N) and z.shape == (N, EMBED) and q.shape == (N, K)
    assert np.isfinite(A_np).all() and np.isfinite(z_np).all() and np.isfinite(q_np).all()
    assert np.allclose(q_np.sum(axis=1), 1.0, atol=5e-3)
    assert np.allclose(A_np, np.asarray(A_ref), atol=2e-2, rtol=2e-2)
    assert np.allclose(z_np, np.asarray(z_ref), atol=2e-2, rtol=2e-2)
    assert np.allclose(q_np, np.asarray(q_ref), atol=2e-2, rtol=2e-2)

    print("KERNEL_OK")
</pallas_src>

<mosaic_0001>
module attributes {stable_mosaic.version = 11 : i64} {
  func.func @_project_kernel(%arg0: i32, %arg1: memref<128x128xf32, #tpu.memory_space<vmem>>, %arg2: memref<128x128xf32, #tpu.memory_space<vmem>>, %arg3: memref<128x128xf32, #tpu.memory_space<vmem>>, %arg4: memref<128x128xbf16, #tpu.memory_space<vmem>>, %arg5: memref<128x128xf32, #tpu.memory_space<vmem>>) attributes {dimension_semantics = [#tpu.dimension_semantics<parallel>], iteration_bounds = array<i64: 2>, scalar_prefetch = 0 : i64, scratch_operands = 0 : i64, tpu.core_type = #tpu.core_type<tc>, window_params = [{transform_indices = @transform_0, window_bounds = array<i64: 128, 128>}, {pipeline_mode = #tpu.pipeline_mode<synchronous>, transform_indices = @transform_1, window_bounds = array<i64: 128, 128>}, {pipeline_mode = #tpu.pipeline_mode<synchronous>, transform_indices = @transform_2, window_bounds = array<i64: 128, 128>}, {transform_indices = @transform_3, window_bounds = array<i64: 128, 128>}, {transform_indices = @transform_4, window_bounds = array<i64: 128, 128>}]} {
    %c0 = arith.constant 0 : index
    %c0_0 = arith.constant 0 : index
    %0 = vector.load %arg1[%c0, %c0_0] : memref<128x128xf32, #tpu.memory_space<vmem>>, vector<128x128xf32>
    %c0_1 = arith.constant 0 : index
    %c0_2 = arith.constant 0 : index
    %1 = vector.load %arg2[%c0_1, %c0_2] : memref<128x128xf32, #tpu.memory_space<vmem>>, vector<128x128xf32>
    %cst = arith.constant dense<0.000000e+00> : vector<128x128xf32>
    %2 = tpu.matmul %0, %1, %cst {dimension_numbers = #tpu.dot_dimension_numbers<[1], [0], [0], [1], [0, 0, 1, 1], [], []>} : vector<128x128xf32>, vector<128x128xf32>, vector<128x128xf32> -> vector<128x128xf32>
    %c0_3 = arith.constant 0 : index
    %c0_4 = arith.constant 0 : index
    %3 = vector.load %arg3[%c0_3, %c0_4] : memref<128x128xf32, #tpu.memory_space<vmem>>, vector<128x128xf32>
    %cst_5 = arith.constant dense<0.000000e+00> : vector<128x128xf32>
    %4 = tpu.matmul %2, %3, %cst_5 {dimension_numbers = #tpu.dot_dimension_numbers<[1], [0], [0], [1], [0, 0, 1, 1], [], []>} : vector<128x128xf32>, vector<128x128xf32>, vector<128x128xf32> -> vector<128x128xf32>
    %c0_6 = arith.constant 0 : index
    %c0_7 = arith.constant 0 : index
    %5 = vector.load %arg5[%c0_6, %c0_7] : memref<128x128xf32, #tpu.memory_space<vmem>>, vector<128x128xf32>
    tpu.vector_store %arg5[%c0_6, %c0_7], %4 {strides = array<i32>} : memref<128x128xf32, #tpu.memory_space<vmem>>, vector<128x128xf32>,
    %6 = arith.truncf %2 : vector<128x128xf32> to vector<128x128xbf16>
    %c0_8 = arith.constant 0 : index
    %c0_9 = arith.constant 0 : index
    %7 = vector.load %arg4[%c0_8, %c0_9] : memref<128x128xbf16, #tpu.memory_space<vmem>>, vector<128x128xbf16>
    tpu.vector_store %arg4[%c0_8, %c0_9], %6 {strides = array<i32>} : memref<128x128xbf16, #tpu.memory_space<vmem>>, vector<128x128xbf16>,
    return
  }
  func.func @transform_0(%arg0: i32) -> (i32, i32) {
    %c0_i32 = arith.constant 0 : i32
    %c0_i32_0 = arith.constant 0 : i32
    return %arg0, %c0_i32 : i32, i32
  }
  func.func @transform_1(%arg0: i32) -> (i32, i32) {
    %c0_i32 = arith.constant 0 : i32
    %c0_i32_0 = arith.constant 0 : i32
    %c0_i32_1 = arith.constant 0 : i32
    return %c0_i32, %c0_i32_0 : i32, i32
  }
  func.func @transform_2(%arg0: i32) -> (i32, i32) {
    %c0_i32 = arith.constant 0 : i32
    %c0_i32_0 = arith.constant 0 : i32
    %c0_i32_1 = arith.constant 0 : i32
    return %c0_i32, %c0_i32_0 : i32, i32
  }
  func.func @transform_3(%arg0: i32) -> (i32, i32) {
    %c0_i32 = arith.constant 0 : i32
    %c0_i32_0 = arith.constant 0 : i32
    return %arg0, %c0_i32 : i32, i32
  }
  func.func @transform_4(%arg0: i32) -> (i32, i32) {
    %c0_i32 = arith.constant 0 : i32
    %c0_i32_0 = arith.constant 0 : i32
    return %arg0, %c0_i32 : i32, i32
  }
}

</mosaic_0001>

<bundles_post_ra>
// kernel: tpu_custom_call.1
= control target key start
LH: loop header
LB: loop body
LE: loop exit
PB: predicated region body
PF: predicated region fallthrough
CT: control target
= control target key end

     0   :  { %10 = vsyncpa [#allocation3], 0  ;;  %s1707_s0 = inlined_call_operand.hbm [shape: f32[256,128], index: 0, kind: input, shape index: {}]   ;;  %s1708_s1 = inlined_call_operand.hbm [shape: f32[128,128], index: 1, kind: input, shape index: {}]   ;;  %s1709_s2 = inlined_call_operand.hbm [shape: f32[128,128], index: 2, kind: input, shape index: {}]   ;;  %s1710_s3 = inlined_call_operand.hbm [shape: bf16[256,128], index: 3, kind: output, shape index: {0}]   ;;  %s1711_s4 = inlined_call_operand.hbm [shape: f32[256,128], index: 4, kind: output, shape index: {1}]  }
   0x1   :  { %12 = vsyncpa [#allocation3 + $0x1], 0 }
   0x2   :  { %13 = vsyncpa [#allocation6], 0 }
   0x3   :  { %14 = vsyncpa [#allocation4], 0 }
   0x4   :  { %16 = vsyncpa [#allocation4 + $0x1], 0 }
   0x5   :  { %17 = vsyncpa [#allocation10], 0 }
   0x6   :  { %19 = vsyncpa [#allocation10 + $0x1], 0  ;;  %s1426_s15 = smov 0   ;;  %s1428_s16 = smov 0  }
   0x7   :  { %s1430_s17 = smov 0   ;;  %s1432_s18 = smov 0  }
   0x8 LB: > { %s1447_s19 = sadd.s32 4294967295, %s1388_s18   ;;  %s852_s20 = sadd.s32 4294967294, %s1388_s18   ;;  %s1388_s18 = sphi %s1432_s18, %s1732_s18   ;;  %s1384_s17 = sphi %s1430_s17, %s1731_s17   ;;  %s1380_s16 = sphi %s1428_s16, %s1730_s16   ;;  %s1376_s15 = sphi %s1426_s15, %s1729_s15  }
   0x9   : > { %p45_p0 = scmp.ne.s32.totalorder %s1380_s16, %s1376_s15  ;;  %p1712_p1 = scmp.eq.s32.totalorder %s1447_s19, 0 }
   0xa   : > { %p111_p2 = scmp.eq.s32.totalorder %s1447_s19, 1  ;;  %p117_p3 = scmp.eq.s32.totalorder %s852_s20, 1 }
   0xb   : > { %p1456_p4 = por %p1712_p1, %p45_p0  ;;  %p853_p5 = scmp.ge.s32.totalorder %s1388_s18, 1 }
   0xc   : > { %p1461_p6 = por %p117_p3, %p45_p0  ;;  %p150_p7 = scmp.lt.s32.totalorder %s1388_s18, 3 }
   0xd   : > { %s1716_s21 = scalar_select %p1456_p4, 1, 0 }
   0xe   : > { %s1717_s22 = scalar_select %p1461_p6, 1, 0 }
   0xf   : > { %p1466_p8 = pnand %p853_p5, %p150_p7  ;;  %s1390_s24 = smov [#allocation5]  }
  0x10   : > { %s162_s25 = sshll.u32 %s1390_s24, 4  ;;  %s1391_s27 = smov [#allocation7]   ;;  %s163_s25 = int_to_ptr.vmem [resolvable:$true] %s162_s25 }
  0x11   : > { %s1718_s23 = scalar_select %p1466_p8, 1, 0 }
  0x12   : > { %p1146_p9 = pneg %p1466_p8  ;;  %s175_s28 = sshll.u32 %s1391_s27, 4  ;;  %s176_s28 = int_to_ptr.vmem [resolvable:$true] %s175_s28 }
  0x13   : > { %s1221_s29 = scalar_lea.vmem %s163_s25, 2048  ;;  %p1229_p5 = scmp.lt.s32.totalorder %s163_s25, %s163_s25 }
  0x14   : > { %p1475_p11 = pnand %p1146_p9, %p1712_p1  ;;  %p1222_p13 = scmp.ne.s32.totalorder %s163_s25, %s1221_s29 }
  0x15   : > { %p1230_p7 = scmp.lt.s32.totalorder %s1221_s29, %s1221_s29 }
  0x16   : > { %p1212_p12 = pneg %p1475_p11 }
  0x17   : > { %p1231_p10 = por %p1230_p7, %p1229_p5 }
  0x18   : > { %p1224_p0 = pnand %p1222_p13, %p1212_p12 }
  0x1a   : > { %p1225_p3 = pneg %p1224_p0 }
  0x1c   : > { %p1232_p9 = pnand %p1231_p10, %p1225_p3 }
  0x1e   : > { %1235 = shalt.err (!%p1232_p9)
}
  0x1f   : > { %s1392_s30 = smov 128   ;;  %s1393_s5 = smov 8  }
  0x20   : > { %1149 = dma.hbm_to_vmem [thread:$0]  (!%p1475_p11), %s1708_s1, 2048, %s163_s25, [#allocation6], %s1392_s30, %s1392_s30, %s1393_s5  }
  0x21   : > { %s1247_s8 = scalar_lea.vmem %s176_s28, 2048  ;;  %p1255_p10 = scmp.lt.s32.totalorder %s176_s28, %s176_s28 }
  0x22   : > { %p1248_p13 = scmp.ne.s32.totalorder %s176_s28, %s1247_s8  ;;  %p1256_p3 = scmp.lt.s32.totalorder %s1247_s8, %s1247_s8 }
  0x24   : > { %p1250_p0 = pnand %p1248_p13, %p1212_p12  ;;  %p1257_p7 = por %p1256_p3, %p1255_p10 }
  0x26   : > { %p1251_p5 = pneg %p1250_p0 }
  0x28   : > { %p1258_p9 = pnand %p1257_p7, %p1251_p5 }
  0x2a   : > { %1261 = shalt.err (!%p1258_p9)
}
  0x2b   : > { %1152 = dma.hbm_to_vmem [thread:$0]  (!%p1475_p11), %s1709_s2, 2048, %s176_s28, [#allocation6], %s1392_s30, %s1392_s30, %s1393_s5  }
  0x2c   : > { %s1504_s11 = sadd.s32 1, %s1388_s18   ;;  %s32_s12 = sadd.s32 1, %s1384_s17 }
  0x2d   : > { %s29_s13 = ssub.s32 %s1388_s18, %s1504_s11  ;;  %p39_p12 = scmp.ne.s32.totalorder %s1384_s17, %s1380_s16 }
  0x2e   : > { %p30_p13 = scmp.eq.s32.totalorder %s29_s13, 0  ;;  %p40_p0 = scmp.eq.s32.totalorder %s1388_s18, 0 }
  0x2f   : > { %p1514_p5 = por %p111_p2, %p39_p12  ;;  %p1166_p10 = scmp.lt.s32.totalorder %s1388_s18, 2 }
  0x30   : > { %s1520_s20 = scalar_select %p30_p13, %s1384_s17, %s32_s12  }
  0x31   : > { %s1720_s14 = scalar_select %p1514_p5, 1, 0 }
  0x32   : > { %p41_p3 = por %p40_p0, %p39_p12  ;;  %s189_s24 = sand.u32 1, %s1384_s17  }
  0x33   : > { %s857_s25 = sshll.u32 %s189_s24, 7  ;;  %s890_s26 = sshll.u32 %s1388_s18, 11 }
  0x34   : > { %s1527_s29 = scalar_lea.hbm %s1707_s0, %s890_s26  ;;  %s193_s6 = scalar_lea.vmem [#allocation2], %s857_s25 }
  0x35   : > { %s200_s7 = sshll.u32 %s193_s6, 4  ;;  %p1531_p2 = pnand %p1166_p10, %p41_p3  ;;  %s1529_s7 = int_to_ptr.vmem [resolvable:$true] %s200_s7 }
  0x36   : > { %s1535_s9 = scalar_lea.sflag [#allocation3], %s189_s24  ;;  %s1262_s10 = scalar_lea.hbm %s1527_s29, 2048 }
  0x37   : > { %p1263_p11 = scmp.ne.s32.totalorder %s1527_s29, %s1262_s10  ;;  %p1264_p7 = pneg %p1531_p2 }
  0x38   : > { %s1267_s25 = scalar_lea.hbm %s1707_s0, 4096  ;;  %p1268_p13 = scmp.lt.s32.totalorder %s1527_s29, %s1707_s0 }
  0x39   : > { %p1265_p9 = pnand %p1264_p7, %p1263_p11  ;;  %p1269_p0 = scmp.lt.s32.totalorder %s1267_s25, %s1262_s10 }
  0x3b   : > { %p1266_p12 = pneg %p1265_p9  ;;  %p1270_p10 = por %p1269_p0, %p1268_p13 }
  0x3d   : > { %p1271_p3 = pnand %p1270_p10, %p1266_p12 }
  0x3f   : > { %1274 = shalt.err (!%p1271_p3)
}
  0x40   : > { %s1275_s24 = scalar_lea.vmem %s1529_s7, 2048  ;;  %s1394_s28 = smov [#allocation2]  }
  0x41   : > { %p1276_p1 = scmp.ne.s32.totalorder %s1529_s7, %s1275_s24  ;;  %s1280_s6 = sshll.u32 %s1394_s28, 4  ;;  %s1281_s6 = int_to_ptr.vmem [resolvable:$false] %s1280_s6 }
  0x42   : > { %s1282_s12 = scalar_lea.vmem %s1281_s6, 4096  ;;  %p1283_p9 = scmp.lt.s32.totalorder %s1529_s7, %s1281_s6 }
  0x43   : > { %p1278_p6 = pnand %p1276_p1, %p1264_p7  ;;  %p1284_p5 = scmp.lt.s32.totalorder %s1282_s12, %s1275_s24 }
  0x45   : > { %p1279_p11 = pneg %p1278_p6  ;;  %p1285_p4 = por %p1284_p5, %p1283_p9 }
  0x47   : > { %p1286_p8 = pnand %p1285_p4, %p1279_p11 }
  0x49   : > { %1289 = shalt.err (!%p1286_p8)
}
  0x4a   : > { %1156 = dma.hbm_to_vmem [thread:$0]  (!%p1531_p2), %s1527_s29, 2048, %s1529_s7, %s1535_s9, %s1392_s30, %s1392_s30, %s1393_s5  }
  0x4b   : > { %p1722_p1 = scmp.ne.s32.totalorder %s1718_s23, 0 }
  0x4c   : > { %s1562_s10 = sand.u32 (!%p1722_p1), 1, %s1380_s16   ;;  %p1723_p4 = scmp.ne.s32.totalorder (!%p1722_p1), %s1716_s21, 0 }
  0x4d   : > { %212 = sbr.rel (%p1722_p1) target bundleno = 552 (0x228), region = 32  ;;  %s861_s13 = sshll.u32 (!%p1722_p1), %s1562_s10, 7 }
  0x4e   : > { %s215_s25 = scalar_lea.sflag (!%p1722_p1), [#allocation3], %s1562_s10  ;;  %s1568_s8 = scalar_lea.vmem (!%p1722_p1), [#allocation2], %s861_s13 }
  0x52   : > { %1359 = dma.done.wait (%p1723_p4), %s215_s25, 2048  }
  0x53   : > { %1361 = vsyncadd (%p1723_p4), %s215_s25, 4294965248  ;;  %p1724_p6 = scmp.eq.s32.totalorder %s1447_s19, 0 }
  0x55   : > { %1363 = dma.done.wait (%p1724_p6), [#allocation6], 4096   ;;  %p1725_p8 = pmov %p1724_p6 }
  0x56   : > { %v290_v0 = vld [vmem:[#allocation5 + $0x78] sm:$0xff]  ;;  %v289_v1 = vld [vmem:[#allocation5 + $0x70] sm:$0xff]  ;;  %v288_v2 = vld [vmem:[#allocation5 + $0x68] sm:$0xff]  ;;  %s864_s21 = sshll.u32 %s1562_s10, 6  ;;  %s907_s5 = sshll.u32 %s1447_s19, 10 }
  0x57   : > { %1365 = vsyncadd (%p1725_p8), [#allocation6], 4294963200  ;;  %1020 = vmatprep.subr.mxu0 %v290_v0  ;;  %v287_v3 = vld [vmem:[#allocation5 + $0x60] sm:$0xff]  ;;  %v286_v5 = vld [vmem:[#allocation5 + $0x58] sm:$0xff]  ;;  %s1595_s23 = scalar_lea.vmem [#allocation8], %s864_s21  ;;  %s1612_s9 = scalar_lea.hbm %s1710_s3, %s907_s5 }
  0x58   : > { %1021 = vmatpush3.msra.mxu0 %v290_v0  ;;  %v259_v4 = vld [vmem:[%s1568_s8] sm:$0xff]  ;;  %v285_v6 = vld [vmem:[#allocation5 + $0x50] sm:$0xff]  ;;  %v284_v7 = vld [vmem:[#allocation5 + $0x48] sm:$0xff]  ;;  %s712_s30 = sshll.u32 %s1595_s23, 4  ;;  %s694_s26 = scalar_lea.sflag [#allocation4], %s1562_s10  ;;  %s1606_s30 = int_to_ptr.vmem [resolvable:$true] %s712_s30 }
  0x59   : > { %1022 = vmatprep.subr.mxu0 %v289_v1  ;;  %1052 = vmatprep.mubr.f32.mxu0 %v259_v4  ;;  %v451_v8 = vld [vmem:[#allocation7 + $0x78] sm:$0xff]  ;;  %v450_v9 = vld [vmem:[#allocation7 + $0x70] sm:$0xff]  ;;  %v283_v10 = vld [vmem:[#allocation5 + $0x40] sm:$0xff]  ;;  %s1290_s27 = scalar_lea.vmem %s1606_s30, 1024  ;;  %p1726_p2 = scmp.ne.s32.totalorder %s1720_s14, 0 }
  0x5a   : > { %1023 = vmatpush3.msra.mxu0 %v289_v1  ;;  %1076 = vmatprep.subr.mxu1 %v451_v8  ;;  %v449_v11 = vld [vmem:[#allocation7 + $0x68] sm:$0xff]  ;;  %v282_v12 = vld [vmem:[#allocation5 + $0x38] sm:$0xff]  ;;  %v448_v13 = vld [vmem:[#allocation7 + $0x60] sm:$0xff]  ;;  %p1291_p5 = scmp.ne.s32.totalorder %s1606_s30, %s1290_s27  ;;  %s1395_s24 = smov [#allocation8]  }
  0x5b   : > { %1024 = vmatprep.subr.mxu0 %v288_v2  ;;  %1077 = vmatpush3.msra.mxu1 %v451_v8  ;;  %v281_v14 = vld [vmem:[#allocation5 + $0x30] sm:$0xff]  ;;  %v447_v15 = vld [vmem:[#allocation7 + $0x58] sm:$0xff]  ;;  %v280_v16 = vld [vmem:[#allocation5 + $0x28] sm:$0xff]  ;;  %s1294_s28 = sshll.u32 %s1395_s24, 4  ;;  %s1295_s28 = int_to_ptr.vmem [resolvable:$false] %s1294_s28 }
  0x5c   : > { %1025 = vmatpush3.msra.mxu0 %v288_v2  ;;  %1078 = vmatprep.subr.mxu1 %v450_v9  ;;  %v446_v17 = vld [vmem:[#allocation7 + $0x50] sm:$0xff]  ;;  %v279_v18 = vld [vmem:[#allocation5 + $0x20] sm:$0xff]  ;;  %v445_v19 = vld [vmem:[#allocation7 + $0x48] sm:$0xff]  ;;  %p1292_p7 = pnand %p1291_p5, %p1726_p2  ;;  %s1296_s6 = scalar_lea.vmem %s1295_s28, 2048 }
  0x5d   : > { %1026 = vmatprep.subr.mxu0 %v287_v3  ;;  %1079 = vmatpush3.msra.mxu1 %v450_v9  ;;  %v278_v20 = vld [vmem:[#allocation5 + $0x18] sm:$0xff]  ;;  %v444_v21 = vld [vmem:[#allocation7 + $0x40] sm:$0xff]  ;;  %v277_v22 = vld [vmem:[#allocation5 + $0x10] sm:$0xff]  ;;  %p1297_p13 = scmp.lt.s32.totalorder %s1606_s30, %s1295_s28  ;;  %p1298_p0 = scmp.lt.s32.totalorder %s1296_s6, %s1290_s27 }
  0x5e   : > { %1027 = vmatpush3.msra.mxu0 %v287_v3  ;;  %1080 = vmatprep.subr.mxu1 %v449_v11  ;;  %v443_v23 = vld [vmem:[#allocation7 + $0x38] sm:$0xff]  ;;  %v276_v24 = vld [vmem:[#allocation5 + $0x8] sm:$0xff]  ;;  %v442_v25 = vld [vmem:[#allocation7 + $0x30] sm:$0xff]  ;;  %p1293_p12 = pneg %p1292_p7 }
  0x5f   : > { %1028 = vmatprep.subr.mxu0 %v286_v5  ;;  %1081 = vmatpush3.msra.mxu1 %v449_v11  ;;  %v275_v26 = vld [vmem:[#allocation5] sm:$0xff]  ;;  %v441_v27 = vld [vmem:[#allocation7 + $0x28] sm:$0xff]  ;;  %v261_v30 = vld [vmem:[%s1568_s8 + $0x10] sm:$0xff]  ;;  %p1299_p10 = por %p1298_p0, %p1297_p13 }
  0x60   : > { %1029 = vmatpush3.msra.mxu0 %v286_v5  ;;  %1082 = vmatprep.subr.mxu1 %v448_v13  ;;  %v260_v28 = vld [vmem:[%s1568_s8 + $0x8] sm:$0xff]  ;;  %v440_v29 = vld [vmem:[#allocation7 + $0x20] sm:$0xff]  ;;  %v439_v31 = vld [vmem:[#allocation7 + $0x18] sm:$0xff] }
  0x61   : > { %1030 = vmatprep.subr.mxu0 %v285_v6  ;;  %1083 = vmatpush3.msra.mxu1 %v448_v13  ;;  %v262_v32 = vld [vmem:[%s1568_s8 + $0x18] sm:$0xff]  ;;  %v438_v33 = vld [vmem:[#allocation7 + $0x10] sm:$0xff]  ;;  %v263_v34 = vld [vmem:[%s1568_s8 + $0x20] sm:$0xff]  ;;  %p1300_p3 = pnand %p1299_p10, %p1293_p12 }
  0x62   : > { %1031 = vmatpush3.msra.mxu0 %v285_v6  ;;  %1084 = vmatprep.subr.mxu1 %v447_v15  ;;  %v264_v35 = vld [vmem:[%s1568_s8 + $0x28] sm:$0xff]  ;;  %v265_v36 = vld [vmem:[%s1568_s8 + $0x30] sm:$0xff]  ;;  %v266_v37 = vld [vmem:[%s1568_s8 + $0x38] sm:$0xff] }
  0x63   : > { %1032 = vmatprep.subr.mxu0 %v284_v7  ;;  %1085 = vmatpush3.msra.mxu1 %v447_v15  ;;  %v267_v38 = vld [vmem:[%s1568_s8 + $0x40] sm:$0xff]  ;;  %v268_v39 = vld [vmem:[%s1568_s8 + $0x48] sm:$0xff]  ;;  %v269_v40 = vld [vmem:[%s1568_s8 + $0x50] sm:$0xff] }
  0x64   : > { %1033 = vmatpush3.msra.mxu0 %v284_v7  ;;  %1086 = vmatprep.subr.mxu1 %v446_v17  ;;  %v270_v41 = vld [vmem:[%s1568_s8 + $0x58] sm:$0xff]  ;;  %v271_v42 = vld [vmem:[%s1568_s8 + $0x60] sm:$0xff]  ;;  %v272_v43 = vld [vmem:[%s1568_s8 + $0x68] sm:$0xff] }
  0x65   : > { %1034 = vmatprep.subr.mxu0 %v283_v10  ;;  %1087 = vmatpush3.msra.mxu1 %v446_v17  ;;  %v273_v44 = vld [vmem:[%s1568_s8 + $0x70] sm:$0xff]  ;;  %v274_v45 = vld [vmem:[%s1568_s8 + $0x78] sm:$0xff]  ;;  %v437_v46 = vld [vmem:[#allocation7 + $0x8] sm:$0xff] }
  0x66   : > { %1035 = vmatpush3.msra.mxu0 %v283_v10  ;;  %1088 = vmatprep.subr.mxu1 %v445_v19  ;;  %v436_v47 = vld [vmem:[#allocation7] sm:$0xff] }
  0x67   : > { %1036 = vmatprep.subr.mxu0 %v282_v12  ;;  %1089 = vmatpush3.msra.mxu1 %v445_v19 }
  0x68   : > { %1037 = vmatpush3.msra.mxu0 %v282_v12  ;;  %1090 = vmatprep.subr.mxu1 %v444_v21 }
  0x69   : > { %1038 = vmatprep.subr.mxu0 %v281_v14  ;;  %1091 = vmatpush3.msra.mxu1 %v444_v21 }
  0x6a   : > { %1039 = vmatpush3.msra.mxu0 %v281_v14  ;;  %1092 = vmatprep.subr.mxu1 %v443_v23 }
  0x6b   : > { %1040 = vmatprep.subr.mxu0 %v280_v16  ;;  %1093 = vmatpush3.msra.mxu1 %v443_v23 }
  0x6c   : > { %1041 = vmatpush3.msra.mxu0 %v280_v16  ;;  %1094 = vmatprep.subr.mxu1 %v442_v25 }
  0x6d   : > { %1042 = vmatprep.subr.mxu0 %v279_v18  ;;  %1095 = vmatpush3.msra.mxu1 %v442_v25 }
  0x6e   : > { %1043 = vmatpush3.msra.mxu0 %v279_v18  ;;  %1096 = vmatprep.subr.mxu1 %v441_v27 }
  0x6f   : > { %1044 = vmatprep.subr.mxu0 %v278_v20  ;;  %1097 = vmatpush3.msra.mxu1 %v441_v27 }
  0x70   : > { %1045 = vmatpush3.msra.mxu0 %v278_v20  ;;  %1098 = vmatprep.subr.mxu1 %v440_v29 }
  0x71   : > { %1046 = vmatprep.subr.mxu0 %v277_v22  ;;  %1099 = vmatpush3.msra.mxu1 %v440_v29 }
  0x72   : > { %1047 = vmatpush3.msra.mxu0 %v277_v22  ;;  %1100 = vmatprep.subr.mxu1 %v439_v31 }
  0x73   : > { %1048 = vmatprep.subr.mxu0 %v276_v24  ;;  %1101 = vmatpush3.msra.mxu1 %v439_v31 }
  0x74   : > { %1049 = vmatpush3.msra.mxu0 %v276_v24  ;;  %1102 = vmatprep.subr.mxu1 %v438_v33 }
  0x75   : > { %1050 = vmatprep.subr.mxu0 %v275_v26  ;;  %1103 = vmatpush3.msra.mxu1 %v438_v33 }
  0x76   : > { %1051 = vmatpush3.msra.mxu0 %v275_v26  ;;  %1104 = vmatprep.subr.mxu1 %v437_v46 }
  0x77   : > { %1053 = vmatmul.mubr.f32.vlgmr.msra.gmra.mxu0 %v260_v28  ;;  %1105 = vmatpush3.msra.mxu1 %v437_v46 }
  0x78   : > { %1055 = vmatprep.mubr.f32.mxu0 %v261_v30  ;;  %1106 = vmatprep.subr.mxu1 %v436_v47 }
  0x79   : > { %1107 = vmatpush3.msra.mxu1 %v436_v47 }
  0x7b   : > { %1056 = vmatmul.mubr.f32.gmra.mxu0 %v262_v32 }
  0x7c   : > { %1058 = vmatprep.mubr.f32.mxu0 %v263_v34 }
  0x7f   : > { %1059 = vmatmul.mubr.f32.gmra.mxu0 %v264_v35 }
  0x80   : > { %1061 = vmatprep.mubr.f32.mxu0 %v265_v36 }
  0x83   : > { %1062 = vmatmul.mubr.f32.gmra.mxu0 %v266_v37 }
  0x84   : > { %1064 = vmatprep.mubr.f32.mxu0 %v267_v38 }
  0x87   : > { %1065 = vmatmul.mubr.f32.gmra.mxu0 %v268_v39 }
  0x88   : > { %1067 = vmatprep.mubr.f32.mxu0 %v269_v40 }
  0x8b   : > { %1068 = vmatmul.mubr.f32.gmra.mxu0 %v270_v41 }
  0x8c   : > { %1070 = vmatprep.mubr.f32.mxu0 %v271_v42 }
  0x8f   : > { %1071 = vmatmul.mubr.f32.gmra.mxu0 %v272_v43 }
  0x90   : > { %1073 = vmatprep.mubr.f32.mxu0 %v273_v44 }
  0x93   : > { %1074 = vmatmul.mubr.f32.gmra.mxu0 %v274_v45 }
 0x137   : > { %v1054_v48 = vpop.f32.mrf.mxu0 }
 0x139   : > { %v357_v49 = vpop.f32.mrf.mxu0 }
 0x13a   : > { %v912_v50 = vpack.c.bf16 %v1054_v48, %v357_v49  ;;  %1108 = vmatprep.mubr.f32.mxu1 %v357_v49 }
 0x13b   : > { %v1057_v51 = vpop.f32.mrf.mxu0  ;;  %1109 = vmatmul.mubr.f32.vlgmr.msra.gmra.mxu1 %v1054_v48 }
 0x13c   : > { %913 = vst [vmem:[%s1595_s23] sm:$0xff] %v912_v50  }
 0x13d   : > { %v367_v52 = vpop.f32.mrf.mxu0 }
 0x13e   : > { %v917_v53 = vpack.c.bf16 %v1057_v51, %v367_v52  ;;  %1111 = vmatprep.mubr.f32.mxu1 %v367_v52 }
 0x13f   : > { %v1060_v54 = vpop.f32.mrf.mxu0  ;;  %1112 = vmatmul.mubr.f32.gmra.mxu1 %v1057_v51 }
 0x140   : > { %949 = vst [vmem:[%s1595_s23 + $0x8] sm:$0xff] %v917_v53  }
 0x141   : > { %v377_v55 = vpop.f32.mrf.mxu0 }
 0x142   : > { %v922_v56 = vpack.c.bf16 %v1060_v54, %v377_v55  ;;  %1114 = vmatprep.mubr.f32.mxu1 %v377_v55 }
 0x143   : > { %v1063_v57 = vpop.f32.mrf.mxu0  ;;  %1115 = vmatmul.mubr.f32.gmra.mxu1 %v1060_v54 }
 0x144   : > { %950 = vst [vmem:[%s1595_s23 + $0x10] sm:$0xff] %v922_v56  }
 0x145   : > { %v387_v58 = vpop.f32.mrf.mxu0 }
 0x146   : > { %v927_v59 = vpack.c.bf16 %v1063_v57, %v387_v58  ;;  %1117 = vmatprep.mubr.f32.mxu1 %v387_v58 }
 0x147   : > { %v1066_v60 = vpop.f32.mrf.mxu0  ;;  %1118 = vmatmul.mubr.f32.gmra.mxu1 %v1063_v57 }
 0x148   : > { %951 = vst [vmem:[%s1595_s23 + $0x18] sm:$0xff] %v927_v59  }
 0x149   : > { %v397_v61 = vpop.f32.mrf.mxu0 }
 0x14a   : > { %v932_v62 = vpack.c.bf16 %v1066_v60, %v397_v61  ;;  %1120 = vmatprep.mubr.f32.mxu1 %v397_v61 }
 0x14b   : > { %v1069_v63 = vpop.f32.mrf.mxu0  ;;  %1121 = vmatmul.mubr.f32.gmra.mxu1 %v1066_v60 }
 0x14c   : > { %952 = vst [vmem:[%s1595_s23 + $0x20] sm:$0xff] %v932_v62  }
 0x14d   : > { %v407_v0 = vpop.f32.mrf.mxu0 }
 0x14e   : > { %v937_v1 = vpack.c.bf16 %v1069_v63, %v407_v0  ;;  %1123 = vmatprep.mubr.f32.mxu1 %v407_v0 }
 0x14f   : > { %v1072_v2 = vpop.f32.mrf.mxu0  ;;  %1124 = vmatmul.mubr.f32.gmra.mxu1 %v1069_v63 }
 0x150   : > { %953 = vst [vmem:[%s1595_s23 + $0x28] sm:$0xff] %v937_v1  }
 0x151   : > { %v417_v3 = vpop.f32.mrf.mxu0 }
 0x152   : > { %v942_v4 = vpack.c.bf16 %v1072_v2, %v417_v3  ;;  %1126 = vmatprep.mubr.f32.mxu1 %v417_v3 }
 0x153   : > { %v1075_v5 = vpop.f32.mrf.mxu0  ;;  %1127 = vmatmul.mubr.f32.gmra.mxu1 %v1072_v2 }
 0x154   : > { %954 = vst [vmem:[%s1595_s23 + $0x30] sm:$0xff] %v942_v4  }
 0x155   : > { %v427_v6 = vpop.f32.mrf.mxu0 }
 0x156   : > { %v947_v7 = vpack.c.bf16 %v1075_v5, %v427_v6  ;;  %1129 = vmatprep.mubr.f32.mxu1 %v427_v6 }
 0x157   : > { %1130 = vmatmul.mubr.f32.gmra.mxu1 %v1075_v5 }
 0x158   : > { %955 = vst [vmem:[%s1595_s23 + $0x38] sm:$0xff] %v947_v7  }
 0x159   : > { %1303 = shalt.err (!%p1300_p3)
}
 0x15a   : > { %s1304_s12 = scalar_lea.hbm %s1612_s9, 1024  ;;  %s1308_s21 = scalar_lea.hbm %s1710_s3, 2048 }
 0x15b   : > { %p1305_p11 = scmp.ne.s32.totalorder %s1612_s9, %s1304_s12  ;;  %p1309_p4 = scmp.lt.s32.totalorder %s1612_s9, %s1710_s3 }
 0x15c   : > { %p1310_p6 = scmp.lt.s32.totalorder %s1308_s21, %s1304_s12 }
 0x15d   : > { %p1306_p9 = pnand %p1305_p11, %p1726_p2 }
 0x15e   : > { %p1311_p8 = por %p1310_p6, %p1309_p4 }
 0x15f   : > { %p1307_p1 = pneg %p1306_p9 }
 0x161   : > { %p1312_p5 = pnand %p1311_p8, %p1307_p1 }
 0x163   : > { %1315 = shalt.err (!%p1312_p5)
}
 0x164   : > { %s1396_s29 = smov 64   ;;  %s1397_s7 = smov 4  }
 0x165   : > { %1142 = dma.vmem_to_hbm [thread:$0]  (%p1726_p2), %s1606_s30, 1024, %s1612_s9, %s694_s26, %s1396_s29, %s1396_s29, %s1397_s7  }
 0x166   : > { %s1639_s27 = scalar_lea.vmem [#allocation9], %s861_s13  ;;  %s908_s13 = sshll.u32 %s1447_s19, 11 }
 0x167   : > { %s728_s30 = sshll.u32 %s1639_s27, 4  ;;  %s1660_s24 = scalar_lea.hbm %s1711_s4, %s908_s13  ;;  %s1663_s30 = int_to_ptr.vmem [resolvable:$true] %s728_s30 }
 0x168   : > { %s699_s28 = scalar_lea.sflag [#allocation10], %s1562_s10  ;;  %s1316_s6 = scalar_lea.vmem %s1663_s30, 2048 }
 0x169   : > { %p1317_p7 = scmp.ne.s32.totalorder %s1663_s30, %s1316_s6  ;;  %s1398_s19 = smov [#allocation9]  }
 0x16a   : > { %s1320_s12 = sshll.u32 %s1398_s19, 4  ;;  %s1321_s12 = int_to_ptr.vmem [resolvable:$false] %s1320_s12 }
 0x16b   : > { %p1318_p12 = pnand %p1317_p7, %p1726_p2  ;;  %s1322_s25 = scalar_lea.vmem %s1321_s12, 4096 }
 0x16c   : > { %p1323_p0 = scmp.lt.s32.totalorder %s1663_s30, %s1321_s12  ;;  %p1324_p10 = scmp.lt.s32.totalorder %s1322_s25, %s1316_s6 }
 0x16d   : > { %p1319_p13 = pneg %p1318_p12 }
 0x16e   : > { %p1325_p3 = por %p1324_p10, %p1323_p0 }
 0x170   : > { %p1326_p11 = pnand %p1325_p3, %p1319_p13 }
 0x1fb   : > { %v1110_v8 = vpop.f32.mrf.mxu1 }
 0x1fc   : > { %598 = vst [vmem:[%s1639_s27 + $0x8] sm:$0xff] %v1110_v8 }
 0x1fd   : > { %v518_v9 = vpop.f32.mrf.mxu1 }
 0x1fe   : > { %597 = vst [vmem:[%s1639_s27] sm:$0xff] %v518_v9 }
 0x1ff   : > { %v1113_v10 = vpop.f32.mrf.mxu1 }
 0x200   : > { %600 = vst [vmem:[%s1639_s27 + $0x18] sm:$0xff] %v1113_v10 }
 0x201   : > { %v528_v11 = vpop.f32.mrf.mxu1 }
 0x202   : > { %599 = vst [vmem:[%s1639_s27 + $0x10] sm:$0xff] %v528_v11 }
 0x203   : > { %v1116_v12 = vpop.f32.mrf.mxu1 }
 0x204   : > { %602 = vst [vmem:[%s1639_s27 + $0x28] sm:$0xff] %v1116_v12 }
 0x205   : > { %v538_v13 = vpop.f32.mrf.mxu1 }
 0x206   : > { %601 = vst [vmem:[%s1639_s27 + $0x20] sm:$0xff] %v538_v13 }
 0x207   : > { %v1119_v14 = vpop.f32.mrf.mxu1 }
 0x208   : > { %604 = vst [vmem:[%s1639_s27 + $0x38] sm:$0xff] %v1119_v14 }
 0x209   : > { %v548_v15 = vpop.f32.mrf.mxu1 }
 0x20a   : > { %603 = vst [vmem:[%s1639_s27 + $0x30] sm:$0xff] %v548_v15 }
 0x20b   : > { %v1122_v16 = vpop.f32.mrf.mxu1 }
 0x20c   : > { %606 = vst [vmem:[%s1639_s27 + $0x48] sm:$0xff] %v1122_v16 }
 0x20d   : > { %v558_v17 = vpop.f32.mrf.mxu1 }
 0x20e   : > { %605 = vst [vmem:[%s1639_s27 + $0x40] sm:$0xff] %v558_v17 }
 0x20f   : > { %v1125_v18 = vpop.f32.mrf.mxu1 }
 0x210   : > { %608 = vst [vmem:[%s1639_s27 + $0x58] sm:$0xff] %v1125_v18 }
 0x211   : > { %v568_v19 = vpop.f32.mrf.mxu1 }
 0x212   : > { %607 = vst [vmem:[%s1639_s27 + $0x50] sm:$0xff] %v568_v19 }
 0x213   : > { %v1128_v20 = vpop.f32.mrf.mxu1 }
 0x214   : > { %610 = vst [vmem:[%s1639_s27 + $0x68] sm:$0xff] %v1128_v20 }
 0x215   : > { %v578_v21 = vpop.f32.mrf.mxu1 }
 0x216   : > { %609 = vst [vmem:[%s1639_s27 + $0x60] sm:$0xff] %v578_v21 }
 0x217   : > { %v1131_v22 = vpop.f32.mrf.mxu1 }
 0x218   : > { %612 = vst [vmem:[%s1639_s27 + $0x78] sm:$0xff] %v1131_v22 }
 0x219   : > { %v588_v23 = vpop.f32.mrf.mxu1 }
 0x21a   : > { %611 = vst [vmem:[%s1639_s27 + $0x70] sm:$0xff] %v588_v23 }
 0x21b   : > { %1329 = shalt.err (!%p1326_p11)
}
 0x21c   : > { %s1330_s8 = scalar_lea.hbm %s1660_s24, 2048  ;;  %s1334_s5 = scalar_lea.hbm %s1711_s4, 4096 }
 0x21d   : > { %p1331_p9 = scmp.ne.s32.totalorder %s1660_s24, %s1330_s8  ;;  %p1335_p6 = scmp.lt.s32.totalorder %s1660_s24, %s1711_s4 }
 0x21e   : > { %p1336_p8 = scmp.lt.s32.totalorder %s1334_s5, %s1330_s8 }
 0x21f   : > { %p1332_p1 = pnand %p1331_p9, %p1726_p2 }
 0x220   : > { %p1337_p5 = por %p1336_p8, %p1335_p6 }
 0x221   : > { %p1333_p4 = pneg %p1332_p1 }
 0x223   : > { %p1338_p7 = pnand %p1337_p5, %p1333_p4 }
 0x225   : > { %1341 = shalt.err (!%p1338_p7)
}
 0x226   : > { %s1399_s27 = smov 128   ;;  %s1400_s13 = smov 8  }
 0x227   : > { %1143 = dma.vmem_to_hbm [thread:$0]  (%p1726_p2), %s1663_s30, 2048, %s1660_s24, %s699_s28, %s1399_s27, %s1399_s27, %s1400_s13  }
 0x228 PF: > { %s743_s9 = sand.u32 1, %s1376_s15   ;;  %p1727_p12 = scmp.ne.s32.totalorder %s1717_s22, 0 }
 0x229   : > { %p1728_p13 = scmp.ge.s32.totalorder %s1388_s18, 2  ;;  %s744_s26 = scalar_lea.sflag [#allocation4], %s743_s9 }
 0x22b   : > { %p1158_p0 = pnand %p1728_p13, %p1727_p12 }
 0x22d   : > { %p1159_p10 = pneg %p1158_p0 }
 0x22f   : > { %1367 = dma.done.wait (%p1159_p10), %s744_s26, 1024  }
 0x230   : > { %1369 = vsyncadd (%p1159_p10), %s744_s26, 4294966272  ;;  %s753_s6 = scalar_lea.sflag [#allocation10], %s743_s9 }
 0x231   : > { %1371 = dma.done.wait (%p1159_p10), %s753_s6, 2048  }
 0x232   : > { %1373 = vsyncadd (%p1159_p10), %s753_s6, 4294965248  ;;  %p22_p2 = scmp.ge.s32.totalorder %s1504_s11, 4   ;;  %s1729_s15 = smov %s1380_s16 }
 0x233   : > { %s1730_s16 = smov %s1384_s17  ;;  %s1731_s17 = smov %s1520_s20 }
 0x234   : > { %s1732_s18 = smov %s1504_s11  ;;  %24 = sbr.rel (!%p22_p2) target bundleno = 8 (0x8), region = 102 }
 0x239   :  { %758 = vsyncpa [#allocation3], 1 }
 0x23a   :  { %760 = vsyncpa [#allocation3 + $0x1], 1 }
 0x23b   :  { %761 = vsyncpa [#allocation6], 1 }
 0x23c   :  { %762 = vsyncpa [#allocation4], 1 }
 0x23d   :  { %764 = vsyncpa [#allocation4 + $0x1], 1 }
 0x23e   :  { %765 = vsyncpa [#allocation10], 1 }
 0x23f   :  { %767 = vsyncpa [#allocation10 + $0x1], 1 }

</bundles_post_ra>
